<compile_context>
chip_gen: v7x
topology: tpu7x:2x2x1
jax: 0.10.0
libtpu: 0.0.40
codegen_flags: <defaults>
</compile_context>

<pallas_src>
import functools

import jax
import jax.numpy as jnp
from jax.experimental import pallas as pl
from jax.experimental.pallas import tpu as pltpu


def _round_up(x, m):
    return ((x + m - 1) // m) * m


# ----------------------------- Pallas kernel -------------------------------


def _fused_dgc_kernel(t_ref, x_ref, w_ref, b_ref, o_ref, fstack_ref, carry_ref,
                      *, num_supports, diff_steps, lanes_per_m):
    """Fused diffusion + projection for one block of batch elements.

    t_ref:      (S, Np, Np)   transition matrices (resident, compute dtype)
    x_ref:      (1, Np, Lb)   input block, lanes = (batch-in-block, P)
    w_ref:      (M*Lb, Qb)    expanded projection weight (resident)
    b_ref:      (1, Qb)       expanded bias (f32, resident)
    o_ref:      (1, Np, Qb)   output block, lanes = (batch-in-block, Q)
    fstack_ref: (Np, M*Lb)    VMEM scratch: stacked diffusion features
    carry_ref:  (2, Np, Lb)   VMEM scratch: f32 Chebyshev carries (x0 / x1)
    """
    Lb = lanes_per_m

    # m = 0 feature: the (already compute-dtype) input block itself.
    x0_c = x_ref[0]                                    # (Np, Lb)
    fstack_ref[:, 0:Lb] = x0_c

    if diff_steps > 0:
        # f32 carries ping-pong between the two scratch slots; x0_c / x1_c are
        # the single compute-dtype casts reused as the next MXU operands.
        carry_ref[0] = x0_c.astype(jnp.float32)
        a, b = 0, 1
        m = 1
        for s in range(num_supports):
            t_s = t_ref[s]                             # (Np, Np)
            # NOTE: x0/x1 deliberately carry across supports, exactly as in
            # the PyTorch module (`x1, x0 = x2, x1` leaks into the next loop).
            x1_f = jnp.dot(t_s, x0_c, preferred_element_type=jnp.float32)
            x1_c = x1_f.astype(x0_c.dtype)
            carry_ref[b] = x1_f
            fstack_ref[:, m * Lb:(m + 1) * Lb] = x1_c
            m += 1
            for _ in range(2, diff_steps + 1):
                x2_f = (2.0 * jnp.dot(t_s, x1_c,
                                      preferred_element_type=jnp.float32)
                        - carry_ref[a])
                x2_c = x2_f.astype(x0_c.dtype)
                carry_ref[a] = x2_f
                fstack_ref[:, m * Lb:(m + 1) * Lb] = x2_c
                m += 1
                a, b = b, a                            # x0 <- x1, x1 <- x2
                x0_c, x1_c = x1_c, x2_c

    # Single packed projection for the whole block: fstack lanes are
    # (m, batch, p); w_ref is block-diagonal over batch so each output lane
    # (batch, q) only contracts against its own batch element's features.
    o_ref[0] = (jnp.dot(fstack_ref[...], w_ref[...],
                        preferred_element_type=jnp.float32)
                + b_ref[...]).astype(o_ref.dtype)


# ------------------------------ JAX wrapper --------------------------------


def random_walk_matrix(adj):
    """D^{-1} A (row-normalized adjacency), mirroring utils.calculate_random_walk_matrix."""
    d = adj.sum(axis=1)
    d_inv = jnp.where(d > 0, 1.0 / d, 0.0)
    return d_inv[:, None] * adj


def _choose_block_b(batch, input_dim, output_dim, block_b):
    # Keep bb*P and bb*Q within one 128-lane group so the block-diagonal
    # projection never costs more than one 128-deep contraction per matrix.
    cap = max(1, 128 // max(input_dim, output_dim, 1))
    bb = max(1, min(block_b, batch, cap))
    # v7x has two TensorCores: keep the parallel grid >= 2 steps when B > 1.
    if batch > 1:
        bb = min(bb, -(-batch // 2))
    return bb


def diffusion_graph_conv(inputs, trans_matrices, weight, bias, *,
                         num_nodes, input_dim, output_dim, diff_steps,
                         activation=None, compute_dtype=jnp.bfloat16,
                         block_b=16):
    """Forward pass of DiffusionGraphConv.

    inputs:         [B, N*P]
    trans_matrices: [S, N, N]  (dense transition matrices)
    weight:         [P*M, Q]   with M = S*diff_steps + 1
    bias:           [Q]
    returns:        [B, N*Q]   (compute_dtype)
    """
    B = inputs.shape[0]
    N, P, Q = num_nodes, input_dim, output_dim
    S = trans_matrices.shape[0]
    M = S * diff_steps + 1

    is_bf16 = jnp.dtype(compute_dtype) == jnp.dtype(jnp.bfloat16)
    Np = _round_up(N, 16 if is_bf16 else 8)

    bb = _choose_block_b(B, P, Q, block_b)
    Bp = _round_up(B, bb)
    nblk = Bp // bb
    Lb = _round_up(bb * P, 128)     # lanes per diffusion matrix: (batch, P)
    Qb = _round_up(bb * Q, 128)     # output lanes: (batch, Q)

    # ---- inputs: [B, N*P] -> (nblk, Np, Lb), lane index = b_in_block*P + p.
    x = inputs.reshape(B, N, P).astype(jnp.float32)
    x = jnp.pad(x, ((0, Bp - B), (0, 0), (0, 0)))
    x = x.reshape(nblk, bb, N, P).transpose(0, 2, 1, 3).reshape(nblk, N, bb * P)
    x = jnp.pad(x, ((0, 0), (0, Np - N), (0, Lb - bb * P))).astype(compute_dtype)

    # ---- transition matrices, zero-padded nodes.
    t = jnp.pad(trans_matrices.astype(jnp.float32),
                ((0, 0), (0, Np - N), (0, Np - N))).astype(compute_dtype)

    # ---- expanded projection weight: (M*Lb, Qb), block-diagonal over the
    #      batch lanes.  weight rows are indexed (p, m) with m fastest.
    w3 = jnp.transpose(weight.astype(jnp.float32).reshape(P, M, Q), (1, 0, 2))
    eye_b = jnp.eye(bb, dtype=jnp.float32)
    wexp = jnp.einsum('bc,mpq->mbpcq', eye_b, w3).reshape(M, bb * P, bb * Q)
    wexp = jnp.pad(wexp, ((0, 0), (0, Lb - bb * P), (0, Qb - bb * Q)))
    wexp = wexp.reshape(M * Lb, Qb).astype(compute_dtype)

    bexp = jnp.tile(bias.astype(jnp.float32), bb)
    bexp = jnp.pad(bexp, (0, Qb - bb * Q)).reshape(1, Qb)

    kernel = functools.partial(_fused_dgc_kernel, num_supports=S,
                               diff_steps=diff_steps, lanes_per_m=Lb)

    itemsize = jnp.dtype(compute_dtype).itemsize
    flops = int(nblk * (2 * S * diff_steps * Np * Np * Lb
                        + 2 * Np * (M * Lb) * Qb))
    bytes_accessed = int(t.size * itemsize + x.size * itemsize
                         + wexp.size * itemsize + bexp.size * 4
                         + nblk * Np * Qb * itemsize)

    # Actual VMEM footprint (double-buffered pipeline operands + scratch) with
    # headroom; never claim all of a v7x core's 64 MiB.
    vmem_need = (2 * t.size * itemsize            # T (double-buffered)
                 + 2 * Np * Lb * itemsize         # x block
                 + 2 * wexp.size * itemsize       # expanded weight
                 + 2 * Qb * 4                     # bias
                 + 2 * Np * Qb * itemsize         # out block
                 + Np * M * Lb * itemsize         # feature-stack scratch
                 + 2 * Np * Lb * 4)               # f32 carry scratch
    vmem_limit = int(min(48 * 2**20, max(4 * 2**20, 2 * vmem_need)))

    out = pl.pallas_call(
        kernel,
        out_shape=jax.ShapeDtypeStruct((nblk, Np, Qb), compute_dtype),
        grid_spec=pltpu.PrefetchScalarGridSpec(
            num_scalar_prefetch=0,
            grid=(nblk,),
            in_specs=[
                pl.BlockSpec((S, Np, Np), lambda i: (0, 0, 0)),   # T resident
                pl.BlockSpec((1, Np, Lb), lambda i: (i, 0, 0)),   # x streams
                pl.BlockSpec((M * Lb, Qb), lambda i: (0, 0)),     # W resident
                pl.BlockSpec((1, Qb), lambda i: (0, 0)),          # bias resident
            ],
            out_specs=pl.BlockSpec((1, Np, Qb), lambda i: (i, 0, 0)),
            scratch_shapes=[
                pltpu.VMEM((Np, M * Lb), compute_dtype),   # feature stack
                pltpu.VMEM((2, Np, Lb), jnp.float32),      # f32 Chebyshev carry
            ],
        ),
        compiler_params=pltpu.CompilerParams(
            dimension_semantics=("parallel",),
            vmem_limit_bytes=vmem_limit,
        ),
        cost_estimate=pl.CostEstimate(
            flops=flops, transcendentals=0, bytes_accessed=bytes_accessed),
    )(t, x, wexp, bexp)

    # (nblk, Np, Qb) with lanes (b_in_block, q)  ->  [B, N*Q]
    out = out[:, :N, :bb * Q].reshape(nblk, N, bb, Q)
    out = out.transpose(0, 2, 1, 3).reshape(Bp, N, Q)[:B]
    out = out.reshape(B, N * Q)
    if activation is not None:
        out = activation(out)
    return out


# --------------------------- pure-JAX reference -----------------------------


def diffusion_graph_conv_ref(inputs, trans_matrices, weight, bias, *,
                             num_nodes, input_dim, output_dim, diff_steps):
    """f32 transcription of the PyTorch forward (incl. the x0/x1 carry)."""
    B = inputs.shape[0]
    N, P, Q = num_nodes, input_dim, output_dim
    S = trans_matrices.shape[0]
    M = S * diff_steps + 1

    x = inputs.reshape(B, N, P)
    x0 = jnp.transpose(x, (1, 2, 0)).reshape(N, P * B)
    feats = [x0]
    if diff_steps > 0:
        for s in range(S):
            t = trans_matrices[s]
            x1 = t @ x0
            feats.append(x1)
            for _ in range(2, diff_steps + 1):
                x2 = 2.0 * (t @ x1) - x0
                feats.append(x2)
                x1, x0 = x2, x1
    xcat = jnp.stack(feats, axis=0).reshape(M, N, P, B)
    xcat = jnp.transpose(xcat, (3, 1, 2, 0)).reshape(B * N, P * M)
    out = xcat @ weight + bias
    return out.reshape(B, N * Q)


# --------------------------------- main -------------------------------------


if __name__ == "__main__":
    B = 2            # batch
    N = 16           # num_nodes
    P = 4            # input_dim
    Q = 8            # output_dim
    K = 2            # diffusion_steps
    S = 2            # dual_random_walk -> two supports
    M = S * K + 1    # num_matrices
    dtype = jnp.float32

    key = jax.random.PRNGKey(0)
    k_adj, k_in, k_w, k_b = jax.random.split(key, 4)

    # Deterministic synthetic adjacency (non-negative).
    adj = jax.random.uniform(k_adj, (N, N), dtype=dtype)
    adj = jnp.where(adj > 0.5, adj, 0.0)

    # dual_random_walk supports (dense stand-ins for the torch sparse matrices).
    trans_matrices = jnp.stack(
        [random_walk_matrix(adj), random_walk_matrix(adj.T)], axis=0)

    # Parameters: xavier_normal_(gain=1.414) for weight.  A small non-zero bias
    # is used (instead of the zero init) so the bias expansion path is tested.
    fan_in, fan_out = P * M, Q
    std = 1.414 * (2.0 / (fan_in + fan_out)) ** 0.5
    weight = std * jax.random.normal(k_w, (P * M, Q), dtype=dtype)
    bias = 0.1 * jax.random.normal(k_b, (Q,), dtype=dtype)

    # Module input: [B, N * P].
    inputs = jax.random.normal(k_in, (B, N * P), dtype=dtype)

    ref = diffusion_graph_conv_ref(
        inputs, trans_matrices, weight, bias,
        num_nodes=N, input_dim=P, output_dim=Q, diff_steps=K)

    # Exact path (f32 MXU operands) -- strict correctness check.
    fwd_f32 = jax.jit(functools.partial(
        diffusion_graph_conv, num_nodes=N, input_dim=P, output_dim=Q,
        diff_steps=K, compute_dtype=jnp.float32))
    out_f32 = jax.block_until_ready(fwd_f32(inputs, trans_matrices, weight, bias))
    assert out_f32.shape == (B, N * Q), out_f32.shape
    assert jnp.allclose(out_f32.astype(jnp.float32), ref,
                        atol=1e-4, rtol=1e-4), float(
        jnp.max(jnp.abs(out_f32.astype(jnp.float32) - ref)))

    # Fast path (bf16 MXU operands, f32 accumulation / f32 Chebyshev carry,
    # bf16 output).
    fwd_bf16 = jax.jit(functools.partial(
        diffusion_graph_conv, num_nodes=N, input_dim=P, output_dim=Q,
        diff_steps=K, compute_dtype=jnp.bfloat16))
    out_bf16 = jax.block_until_ready(fwd_bf16(inputs, trans_matrices, weight, bias))
    assert out_bf16.shape == (B, N * Q), out_bf16.shape
    assert jnp.allclose(out_bf16.astype(jnp.float32), ref,
                        atol=1e-1, rtol=5e-2), float(
        jnp.max(jnp.abs(out_bf16.astype(jnp.float32) - ref)))

    print("KERNEL_OK")
</pallas_src>

<mosaic_0001>
module attributes {stable_mosaic.version = 11 : i64} {
  func.func @_fused_dgc_kernel(%arg0: i32, %arg1: memref<2x16x16xf32, #tpu.memory_space<vmem>>, %arg2: memref<1x16x128xf32, #tpu.memory_space<vmem>>, %arg3: memref<640x128xf32, #tpu.memory_space<vmem>>, %arg4: memref<1x128xf32, #tpu.memory_space<vmem>>, %arg5: memref<1x16x128xf32, #tpu.memory_space<vmem>>, %arg6: memref<16x640xf32, #tpu.memory_space<vmem>>, %arg7: memref<2x16x128xf32, #tpu.memory_space<vmem>>) attributes {dimension_semantics = [#tpu.dimension_semantics<parallel>], iteration_bounds = array<i64: 2>, scalar_prefetch = 0 : i64, scratch_operands = 2 : i64, tpu.core_type = #tpu.core_type<tc>, window_params = [{pipeline_mode = #tpu.pipeline_mode<synchronous>, transform_indices = @transform_0, window_bounds = array<i64: 2, 16, 16>}, {transform_indices = @transform_1, window_bounds = array<i64: 1, 16, 128>}, {pipeline_mode = #tpu.pipeline_mode<synchronous>, transform_indices = @transform_2, window_bounds = array<i64: 640, 128>}, {pipeline_mode = #tpu.pipeline_mode<synchronous>, transform_indices = @transform_3, window_bounds = array<i64: 1, 128>}, {transform_indices = @transform_4, window_bounds = array<i64: 1, 16, 128>}]} {
    %c0 = arith.constant 0 : index
    %c0_0 = arith.constant 0 : index
    %c0_1 = arith.constant 0 : index
    %0 = vector.load %arg2[%c0, %c0_0, %c0_1] : memref<1x16x128xf32, #tpu.memory_space<vmem>>, vector<1x16x128xf32>
    %1 = vector.shape_cast %0 : vector<1x16x128xf32> to vector<16x128xf32>
    %c0_2 = arith.constant 0 : index
    %c0_3 = arith.constant 0 : index
    %2 = vector.load %arg6[%c0_2, %c0_3] : memref<16x640xf32, #tpu.memory_space<vmem>>, vector<16x128xf32>
    tpu.vector_store %arg6[%c0_2, %c0_3], %1 {strides = array<i32>} : memref<16x640xf32, #tpu.memory_space<vmem>>, vector<16x128xf32>,
    %c0_4 = arith.constant 0 : index
    %c0_5 = arith.constant 0 : index
    %c0_6 = arith.constant 0 : index
    %3 = vector.load %arg7[%c0_4, %c0_5, %c0_6] : memref<2x16x128xf32, #tpu.memory_space<vmem>>, vector<1x16x128xf32>
    %4 = vector.shape_cast %3 : vector<1x16x128xf32> to vector<16x128xf32>
    %5 = vector.shape_cast %1 : vector<16x128xf32> to vector<1x16x128xf32>
    tpu.vector_store %arg7[%c0_4, %c0_5, %c0_6], %5 {strides = array<i32>} : memref<2x16x128xf32, #tpu.memory_space<vmem>>, vector<1x16x128xf32>,
    %c0_7 = arith.constant 0 : index
    %c0_8 = arith.constant 0 : index
    %c0_9 = arith.constant 0 : index
    %6 = vector.load %arg1[%c0_7, %c0_8, %c0_9] : memref<2x16x16xf32, #tpu.memory_space<vmem>>, vector<1x16x16xf32>
    %7 = vector.shape_cast %6 : vector<1x16x16xf32> to vector<16x16xf32>
    %cst = arith.constant dense<0.000000e+00> : vector<16x128xf32>
    %8 = tpu.matmul %7, %1, %cst {dimension_numbers = #tpu.dot_dimension_numbers<[1], [0], [0], [1], [0, 0, 1, 1], [], []>} : vector<16x16xf32>, vector<16x128xf32>, vector<16x128xf32> -> vector<16x128xf32>
    %c1 = arith.constant 1 : index
    %c0_10 = arith.constant 0 : index
    %c0_11 = arith.constant 0 : index
    %9 = vector.load %arg7[%c1, %c0_10, %c0_11] : memref<2x16x128xf32, #tpu.memory_space<vmem>>, vector<1x16x128xf32>
    %10 = vector.shape_cast %9 : vector<1x16x128xf32> to vector<16x128xf32>
    %11 = vector.shape_cast %8 : vector<16x128xf32> to vector<1x16x128xf32>
    tpu.vector_store %arg7[%c1, %c0_10, %c0_11], %11 {strides = array<i32>} : memref<2x16x128xf32, #tpu.memory_space<vmem>>, vector<1x16x128xf32>,
    %c0_12 = arith.constant 0 : index
    %c128 = arith.constant 128 : index
    %12 = vector.load %arg6[%c0_12, %c128] : memref<16x640xf32, #tpu.memory_space<vmem>>, vector<16x128xf32>
    tpu.vector_store %arg6[%c0_12, %c128], %8 {strides = array<i32>} : memref<16x640xf32, #tpu.memory_space<vmem>>, vector<16x128xf32>,
    %cst_13 = arith.constant dense<0.000000e+00> : vector<16x128xf32>
    %13 = tpu.matmul %7, %8, %cst_13 {dimension_numbers = #tpu.dot_dimension_numbers<[1], [0], [0], [1], [0, 0, 1, 1], [], []>} : vector<16x16xf32>, vector<16x128xf32>, vector<16x128xf32> -> vector<16x128xf32>
    %cst_14 = arith.constant 2.000000e+00 : f32
    %14 = vector.broadcast %cst_14 : f32 to vector<16x128xf32>
    %15 = arith.mulf %14, %13 : vector<16x128xf32>
    %c0_15 = arith.constant 0 : index
    %c0_16 = arith.constant 0 : index
    %c0_17 = arith.constant 0 : index
    %16 = vector.load %arg7[%c0_15, %c0_16, %c0_17] : memref<2x16x128xf32, #tpu.memory_space<vmem>>, vector<1x16x128xf32>
    %17 = vector.shape_cast %16 : vector<1x16x128xf32> to vector<16x128xf32>
    %18 = arith.subf %15, %17 : vector<16x128xf32>
    %c0_18 = arith.constant 0 : index
    %c0_19 = arith.constant 0 : index
    %c0_20 = arith.constant 0 : index
    %19 = vector.load %arg7[%c0_18, %c0_19, %c0_20] : memref<2x16x128xf32, #tpu.memory_space<vmem>>, vector<1x16x128xf32>
    %20 = vector.shape_cast %19 : vector<1x16x128xf32> to vector<16x128xf32>
    %21 = vector.shape_cast %18 : vector<16x128xf32> to vector<1x16x128xf32>
    tpu.vector_store %arg7[%c0_18, %c0_19, %c0_20], %21 {strides = array<i32>} : memref<2x16x128xf32, #tpu.memory_space<vmem>>, vector<1x16x128xf32>,
    %c0_21 = arith.constant 0 : index
    %c256 = arith.constant 256 : index
    %22 = vector.load %arg6[%c0_21, %c256] : memref<16x640xf32, #tpu.memory_space<vmem>>, vector<16x128xf32>
    tpu.vector_store %arg6[%c0_21, %c256], %18 {strides = array<i32>} : memref<16x640xf32, #tpu.memory_space<vmem>>, vector<16x128xf32>,
    %c1_22 = arith.constant 1 : index
    %c0_23 = arith.constant 0 : index
    %c0_24 = arith.constant 0 : index
    %23 = vector.load %arg1[%c1_22, %c0_23, %c0_24] : memref<2x16x16xf32, #tpu.memory_space<vmem>>, vector<1x16x16xf32>
    %24 = vector.shape_cast %23 : vector<1x16x16xf32> to vector<16x16xf32>
    %cst_25 = arith.constant dense<0.000000e+00> : vector<16x128xf32>
    %25 = tpu.matmul %24, %8, %cst_25 {dimension_numbers = #tpu.dot_dimension_numbers<[1], [0], [0], [1], [0, 0, 1, 1], [], []>} : vector<16x16xf32>, vector<16x128xf32>, vector<16x128xf32> -> vector<16x128xf32>
    %c0_26 = arith.constant 0 : index
    %c0_27 = arith.constant 0 : index
    %c0_28 = arith.constant 0 : index
    %26 = vector.load %arg7[%c0_26, %c0_27, %c0_28] : memref<2x16x128xf32, #tpu.memory_space<vmem>>, vector<1x16x128xf32>
    %27 = vector.shape_cast %26 : vector<1x16x128xf32> to vector<16x128xf32>
    %28 = vector.shape_cast %25 : vector<16x128xf32> to vector<1x16x128xf32>
    tpu.vector_store %arg7[%c0_26, %c0_27, %c0_28], %28 {strides = array<i32>} : memref<2x16x128xf32, #tpu.memory_space<vmem>>, vector<1x16x128xf32>,
    %c0_29 = arith.constant 0 : index
    %c384 = arith.constant 384 : index
    %29 = vector.load %arg6[%c0_29, %c384] : memref<16x640xf32, #tpu.memory_space<vmem>>, vector<16x128xf32>
    tpu.vector_store %arg6[%c0_29, %c384], %25 {strides = array<i32>} : memref<16x640xf32, #tpu.memory_space<vmem>>, vector<16x128xf32>,
    %cst_30 = arith.constant dense<0.000000e+00> : vector<16x128xf32>
    %30 = tpu.matmul %24, %25, %cst_30 {dimension_numbers = #tpu.dot_dimension_numbers<[1], [0], [0], [1], [0, 0, 1, 1], [], []>} : vector<16x16xf32>, vector<16x128xf32>, vector<16x128xf32> -> vector<16x128xf32>
    %cst_31 = arith.constant 2.000000e+00 : f32
    %31 = vector.broadcast %cst_31 : f32 to vector<16x128xf32>
    %32 = arith.mulf %31, %30 : vector<16x128xf32>
    %c1_32 = arith.constant 1 : index
    %c0_33 = arith.constant 0 : index
    %c0_34 = arith.constant 0 : index
    %33 = vector.load %arg7[%c1_32, %c0_33, %c0_34] : memref<2x16x128xf32, #tpu.memory_space<vmem>>, vector<1x16x128xf32>
    %34 = vector.shape_cast %33 : vector<1x16x128xf32> to vector<16x128xf32>
    %35 = arith.subf %32, %34 : vector<16x128xf32>
    %c1_35 = arith.constant 1 : index
    %c0_36 = arith.constant 0 : index
    %c0_37 = arith.constant 0 : index
    %36 = vector.load %arg7[%c1_35, %c0_36, %c0_37] : memref<2x16x128xf32, #tpu.memory_space<vmem>>, vector<1x16x128xf32>
    %37 = vector.shape_cast %36 : vector<1x16x128xf32> to vector<16x128xf32>
    %38 = vector.shape_cast %35 : vector<16x128xf32> to vector<1x16x128xf32>
    tpu.vector_store %arg7[%c1_35, %c0_36, %c0_37], %38 {strides = array<i32>} : memref<2x16x128xf32, #tpu.memory_space<vmem>>, vector<1x16x128xf32>,
    %c0_38 = arith.constant 0 : index
    %c512 = arith.constant 512 : index
    %39 = vector.load %arg6[%c0_38, %c512] : memref<16x640xf32, #tpu.memory_space<vmem>>, vector<16x128xf32>
    tpu.vector_store %arg6[%c0_38, %c512], %35 {strides = array<i32>} : memref<16x640xf32, #tpu.memory_space<vmem>>, vector<16x128xf32>,
    %c0_39 = arith.constant 0 : index
    %c0_40 = arith.constant 0 : index
    %40 = vector.load %arg6[%c0_39, %c0_40] : memref<16x640xf32, #tpu.memory_space<vmem>>, vector<16x640xf32>
    %c0_41 = arith.constant 0 : index
    %c0_42 = arith.constant 0 : index
    %41 = vector.load %arg3[%c0_41, %c0_42] : memref<640x128xf32, #tpu.memory_space<vmem>>, vector<640x128xf32>
    %cst_43 = arith.constant dense<0.000000e+00> : vector<16x128xf32>
    %42 = tpu.matmul %40, %41, %cst_43 {dimension_numbers = #tpu.dot_dimension_numbers<[1], [0], [0], [1], [0, 0, 1, 1], [], []>} : vector<16x640xf32>, vector<640x128xf32>, vector<16x128xf32> -> vector<16x128xf32>
    %c0_44 = arith.constant 0 : index
    %c0_45 = arith.constant 0 : index
    %43 = vector.load %arg4[%c0_44, %c0_45] : memref<1x128xf32, #tpu.memory_space<vmem>>, vector<1x128xf32>
    %44 = vector.broadcast %43 : vector<1x128xf32> to vector<16x128xf32>
    %45 = arith.addf %42, %44 : vector<16x128xf32>
    %c0_46 = arith.constant 0 : index
    %c0_47 = arith.constant 0 : index
    %c0_48 = arith.constant 0 : index
    %46 = vector.load %arg5[%c0_46, %c0_47, %c0_48] : memref<1x16x128xf32, #tpu.memory_space<vmem>>, vector<1x16x128xf32>
    %47 = vector.shape_cast %46 : vector<1x16x128xf32> to vector<16x128xf32>
    %48 = vector.shape_cast %45 : vector<16x128xf32> to vector<1x16x128xf32>
    tpu.vector_store %arg5[%c0_46, %c0_47, %c0_48], %48 {strides = array<i32>} : memref<1x16x128xf32, #tpu.memory_space<vmem>>, vector<1x16x128xf32>,
    return
  }
  func.func @transform_0(%arg0: i32) -> (i32, i32, i32) {
    %c0_i32 = arith.constant 0 : i32
    %c0_i32_0 = arith.constant 0 : i32
    %c0_i32_1 = arith.constant 0 : i32
    %c0_i32_2 = arith.constant 0 : i32
    return %c0_i32, %c0_i32_0, %c0_i32_1 : i32, i32, i32
  }
  func.func @transform_1(%arg0: i32) -> (i32, i32, i32) {
    %c0_i32 = arith.constant 0 : i32
    %c0_i32_0 = arith.constant 0 : i32
    %c0_i32_1 = arith.constant 0 : i32
    return %arg0, %c0_i32, %c0_i32_0 : i32, i32, i32
  }
  func.func @transform_2(%arg0: i32) -> (i32, i32) {
    %c0_i32 = arith.constant 0 : i32
    %c0_i32_0 = arith.constant 0 : i32
    %c0_i32_1 = arith.constant 0 : i32
    return %c0_i32, %c0_i32_0 : i32, i32
  }
  func.func @transform_3(%arg0: i32) -> (i32, i32) {
    %c0_i32 = arith.constant 0 : i32
    %c0_i32_0 = arith.constant 0 : i32
    %c0_i32_1 = arith.constant 0 : i32
    return %c0_i32, %c0_i32_0 : i32, i32
  }
  func.func @transform_4(%arg0: i32) -> (i32, i32, i32) {
    %c0_i32 = arith.constant 0 : i32
    %c0_i32_0 = arith.constant 0 : i32
    %c0_i32_1 = arith.constant 0 : i32
    return %arg0, %c0_i32, %c0_i32_0 : i32, i32, i32
  }
}

</mosaic_0001>

<bundles_post_ra>
// kernel: diffusion_graph_conv.1
= control target key start
LH: loop header
LB: loop body
LE: loop exit
PB: predicated region body
PF: predicated region fallthrough
CT: control target
= control target key end

     0   :  { %s1280_s15 = smov 0   ;;  %s1597_s0 = inlined_call_operand.vmem [shape: f32[2,16,16], index: 0, kind: input, shape index: {}]   ;;  %s1598_s1 = inlined_call_operand.vmem [shape: f32[2,16,128], index: 1, kind: input, shape index: {}]   ;;  %s1599_s2 = inlined_call_operand.vmem [shape: f32[640,128], index: 2, kind: input, shape index: {}]   ;;  %s1600_s3 = inlined_call_operand.vmem [shape: f32[1,128], index: 3, kind: input, shape index: {}]   ;;  %s1601_s4 = inlined_call_operand.vmem [shape: f32[2,16,128], index: 4, kind: output, shape index: {}]  }
   0x1 LB: > { %s930_s16 = sadd.s32 4294967295, %s1253_s15   ;;  %p934_p0 = scmp.ge.s32.totalorder %s1253_s15, 1  ;;  %s1253_s15 = sphi %s1280_s15, %s14_s15  }
   0x2   : > { %p162_p1 = scmp.lt.s32.totalorder %s1253_s15, 3 }
   0x4   : > { %p163_p2 = pnand %p934_p0, %p162_p1 }
   0x5   : > { %p188_p3 = scmp.lt.s32.totalorder (!%p163_p2), %s930_s16, 1  ;;  %v204_v0 = vld [vmem:[%s1597_s0] sm:$0xff] (!%p163_p2)  ;;  %vm206_vm0 = vcmask (!%p163_p2), 130048   ;;  %v578_v2 = vld [vmem:[%s1599_s2 + $0x88] sm:$0xff] (!%p163_p2)  ;;  %v579_v7 = vld [vmem:[%s1599_s2 + $0x90] sm:$0xff] (!%p163_p2) }
   0x6   : > { %166 = sbr.rel (%p163_p2) target bundleno = 899 (0x383), region = 36  ;;  %v577_v1 = vld [vmem:[%s1599_s2 + $0x80] sm:$0xff] (!%p163_p2)  ;;  %1068 = vmatprep.mubr.msk.f32.mxu1 (!%p163_p2), %vm206_vm0, %v204_v0  ;;  %v562_v4 = vld [vmem:[%s1599_s2 + $0x8] sm:$0xff] (!%p163_p2)  ;;  %v580_v8 = vld [vmem:[%s1599_s2 + $0x98] sm:$0xff] (!%p163_p2) }
   0x7   : > { %v561_v3 = vld [vmem:[%s1599_s2] sm:$0xff] (!%p163_p2)  ;;  %v1143_v5 = vpack.c.bf16 (!%p163_p2), %v578_v2, %v577_v1  ;;  %v563_v9 = vld [vmem:[%s1599_s2 + $0x10] sm:$0xff] (!%p163_p2)  ;;  %v1147_v10 = vpack.c.bf16 (!%p163_p2), %v580_v8, %v579_v7  ;;  %v564_v11 = vld [vmem:[%s1599_s2 + $0x18] sm:$0xff] (!%p163_p2) }
   0x8   : > { %v1145_v6 = vpack.c.bf16 (!%p163_p2), %v562_v4, %v561_v3  ;;  %v581_v12 = vld [vmem:[%s1599_s2 + $0xa0] sm:$0xff] (!%p163_p2)  ;;  %v582_v13 = vld [vmem:[%s1599_s2 + $0xa8] sm:$0xff] (!%p163_p2)  ;;  %v1149_v14 = vpack.c.bf16 (!%p163_p2), %v564_v11, %v563_v9  ;;  %v583_v21 = vld [vmem:[%s1599_s2 + $0xb0] sm:$0xff] (!%p163_p2) }
   0x9   : > { %1144 = vmatprep.subr.bf16.mxu0 (!%p163_p2), %v1143_v5  ;;  %v565_v15 = vld [vmem:[%s1599_s2 + $0x20] sm:$0xff] (!%p163_p2)  ;;  %v1151_v18 = vpack.c.bf16 (!%p163_p2), %v582_v13, %v581_v12  ;;  %v566_v19 = vld [vmem:[%s1599_s2 + $0x28] sm:$0xff] (!%p163_p2)  ;;  %v584_v22 = vld [vmem:[%s1599_s2 + $0xb8] sm:$0xff] (!%p163_p2) }
   0xa   : > { %1146 = vmatpush3.bf16.msra.mxu0 (!%p163_p2), %v1145_v6  ;;  %v1153_v23 = vpack.c.bf16 (!%p163_p2), %v566_v19, %v565_v15  ;;  %v205_v24 = vld [vmem:[%s1597_s0 + $0x8] sm:$0xff] (!%p163_p2)  ;;  %v1155_v25 = vpack.c.bf16 (!%p163_p2), %v584_v22, %v583_v21  ;;  %v567_v26 = vld [vmem:[%s1599_s2 + $0x30] sm:$0xff] (!%p163_p2)  ;;  %v568_v27 = vld [vmem:[%s1599_s2 + $0x38] sm:$0xff] (!%p163_p2) }
   0xb   : > { %1148 = vmatprep.subr.bf16.mxu0 (!%p163_p2), %v1147_v10  ;;  %v585_v28 = vld [vmem:[%s1599_s2 + $0xc0] sm:$0xff] (!%p163_p2)  ;;  %v586_v29 = vld [vmem:[%s1599_s2 + $0xc8] sm:$0xff] (!%p163_p2)  ;;  %v1157_v30 = vpack.c.bf16 (!%p163_p2), %v568_v27, %v567_v26  ;;  %v587_v34 = vld [vmem:[%s1599_s2 + $0xd0] sm:$0xff] (!%p163_p2) }
   0xc   : > { %v1159_v31 = vpack.c.bf16 (!%p163_p2), %v586_v29, %v585_v28  ;;  %v569_v32 = vld [vmem:[%s1599_s2 + $0x40] sm:$0xff] (!%p163_p2)  ;;  %v570_v33 = vld [vmem:[%s1599_s2 + $0x48] sm:$0xff] (!%p163_p2)  ;;  %v588_v35 = vld [vmem:[%s1599_s2 + $0xd8] sm:$0xff] (!%p163_p2) }
   0xd   : > { %s1603_s16 = smov (!%p188_p3, %s930_s16), 1  ;;  %v1161_v36 = vpack.c.bf16 %v570_v33, %v569_v32  ;;  %v1163_v37 = vpack.c.bf16 %v588_v35, %v587_v34  ;;  %v571_v38 = vld [vmem:[%s1599_s2 + $0x50] sm:$0xff]  ;;  %v572_v39 = vld [vmem:[%s1599_s2 + $0x58] sm:$0xff]  ;;  %v589_v40 = vld [vmem:[%s1599_s2 + $0xe0] sm:$0xff] }
   0xe   : > { %s952_s13 = sshll.u32 %s1603_s16, 4  ;;  %1150 = vmatpush3.bf16.msra.mxu0 %v1149_v14  ;;  %v590_v41 = vld [vmem:[%s1599_s2 + $0xe8] sm:$0xff]  ;;  %v1165_v42 = vpack.c.bf16 %v572_v39, %v571_v38  ;;  %v573_v44 = vld [vmem:[%s1599_s2 + $0x60] sm:$0xff]  ;;  %v591_v46 = vld [vmem:[%s1599_s2 + $0xf0] sm:$0xff] }
   0xf   : > { %s192_s18 = scalar_lea.vmem %s1598_s1, %s952_s13  ;;  %1152 = vmatprep.subr.bf16.mxu0 %v1151_v18  ;;  %v1167_v43 = vpack.c.bf16 %v590_v41, %v589_v40  ;;  %v574_v45 = vld [vmem:[%s1599_s2 + $0x68] sm:$0xff]  ;;  %v592_v47 = vld [vmem:[%s1599_s2 + $0xf8] sm:$0xff]  ;;  %v575_v50 = vld [vmem:[%s1599_s2 + $0x70] sm:$0xff]  ;;  %s197_s5 = scalar_lea.vmem %s1601_s4, %s952_s13 }
  0x10   : > { %v1333_v16 = vld [vmem:[%s192_s18] sm:$0xff]  ;;  %v1335_v17 = vld [vmem:[%s192_s18 + $0x8] sm:$0xff]  ;;  %v1169_v48 = vpack.c.bf16 %v574_v45, %v573_v44  ;;  %v1171_v49 = vpack.c.bf16 %v592_v47, %v591_v46  ;;  %v576_v51 = vld [vmem:[%s1599_s2 + $0x78] sm:$0xff] }
  0x11   : > { %v1127_v20 = vpack.c.bf16 %v1335_v17, %v1333_v16  ;;  %v1173_v52 = vpack.c.bf16 %v576_v51, %v575_v50  ;;  %v943_v56 = vld [vmem:[%s1597_s0 + $0x10] sm:$0xff]  ;;  %v944_v57 = vld [vmem:[%s1597_s0 + $0x18] sm:$0xff]  ;;  %v625_v58 = vld [vmem:[%s1599_s2 + $0x200] sm:$0xff] }
  0x12   : > { %1154 = vmatpush3.bf16.msra.mxu0 %v1153_v23  ;;  %v626_v59 = vld [vmem:[%s1599_s2 + $0x208] sm:$0xff]  ;;  %v627_v60 = vld [vmem:[%s1599_s2 + $0x210] sm:$0xff]  ;;  %v628_v62 = vld [vmem:[%s1599_s2 + $0x218] sm:$0xff] }
  0x13   : > { %1128 = vmatprep.subr.bf16.mxu1 %v1127_v20  ;;  %1156 = vmatprep.subr.bf16.mxu0 %v1155_v25  ;;  %v1207_v61 = vpack.c.bf16 %v626_v59, %v625_v58  ;;  %v1211_v63 = vpack.c.bf16 %v628_v62, %v627_v60  ;;  %v630_v1 = vld [vmem:[%s1599_s2 + $0x228] sm:$0xff]  ;;  %v631_v3 = vld [vmem:[%s1599_s2 + $0x230] sm:$0xff]  ;;  %v632_v4 = vld [vmem:[%s1599_s2 + $0x238] sm:$0xff] }
  0x14   : > { %1130 = vmatpush3.bf16.msra.mxu1 %v1127_v20  ;;  %v1219_v5 = vpack.c.bf16 %v632_v4, %v631_v3  ;;  %v633_v6 = vld [vmem:[%s1599_s2 + $0x240] sm:$0xff]  ;;  %v634_v7 = vld [vmem:[%s1599_s2 + $0x248] sm:$0xff]  ;;  %v635_v9 = vld [vmem:[%s1599_s2 + $0x250] sm:$0xff] }
  0x15   : > { %v1223_v8 = vpack.c.bf16 %v634_v7, %v633_v6  ;;  %v636_v10 = vld [vmem:[%s1599_s2 + $0x258] sm:$0xff]  ;;  %v637_v12 = vld [vmem:[%s1599_s2 + $0x260] sm:$0xff]  ;;  %v638_v13 = vld [vmem:[%s1599_s2 + $0x268] sm:$0xff] }
  0x16   : > { %1158 = vmatpush3.bf16.msra.mxu0 %v1157_v30  ;;  %v1227_v11 = vpack.c.bf16 %v636_v10, %v635_v9  ;;  %v1231_v14 = vpack.c.bf16 %v638_v13, %v637_v12  ;;  %v609_v19 = vld [vmem:[%s1599_s2 + $0x180] sm:$0xff]  ;;  %v610_v20 = vld [vmem:[%s1599_s2 + $0x188] sm:$0xff]  ;;  %v611_v27 = vld [vmem:[%s1599_s2 + $0x190] sm:$0xff] }
  0x17   : > { %1069 = vmatmul.mubr.msk.f32.vlgmr.msra.gmra.mrb[0].mxu1 %vm206_vm0, %v205_v24  ;;  %1160 = vmatprep.subr.bf16.mxu0 %v1159_v31  ;;  %v593_v25 = vld [vmem:[%s1599_s2 + $0x100] sm:$0xff]  ;;  %v594_v26 = vld [vmem:[%s1599_s2 + $0x108] sm:$0xff]  ;;  %v612_v28 = vld [vmem:[%s1599_s2 + $0x198] sm:$0xff] }
  0x18   : > { %1075 = vmatprep.mubr.msk.f32.mxu1 %vm206_vm0, %v204_v0  ;;  %v629_v0 = vld [vmem:[%s1599_s2 + $0x220] sm:$0xff]  ;;  %v1177_v29 = vpack.c.bf16 %v594_v26, %v593_v25  ;;  %v1179_v30 = vpack.c.bf16 %v612_v28, %v611_v27  ;;  %v595_v31 = vld [vmem:[%s1599_s2 + $0x110] sm:$0xff]  ;;  %v596_v32 = vld [vmem:[%s1599_s2 + $0x118] sm:$0xff] }
  0x19   : > { %v1215_v2 = vpack.c.bf16 %v630_v1, %v629_v0  ;;  %v613_v33 = vld [vmem:[%s1599_s2 + $0x1a0] sm:$0xff]  ;;  %v614_v34 = vld [vmem:[%s1599_s2 + $0x1a8] sm:$0xff]  ;;  %v1181_v35 = vpack.c.bf16 %v596_v32, %v595_v31  ;;  %v615_v39 = vld [vmem:[%s1599_s2 + $0x1b0] sm:$0xff] }
  0x1a   : > { %1162 = vmatpush3.bf16.msra.mxu0 %v1161_v36  ;;  %v1183_v36 = vpack.c.bf16 %v614_v34, %v613_v33  ;;  %v598_v38 = vld [vmem:[%s1599_s2 + $0x128] sm:$0xff]  ;;  %v616_v40 = vld [vmem:[%s1599_s2 + $0x1b8] sm:$0xff]  ;;  %v617_v45 = vld [vmem:[%s1599_s2 + $0x1c0] sm:$0xff] }
  0x1b   : > { %1164 = vmatprep.subr.bf16.mxu0 %v1163_v37  ;;  %v597_v37 = vld [vmem:[%s1599_s2 + $0x120] sm:$0xff]  ;;  %v600_v44 = vld [vmem:[%s1599_s2 + $0x138] sm:$0xff]  ;;  %v618_v46 = vld [vmem:[%s1599_s2 + $0x1c8] sm:$0xff] }
  0x1c   : > { %v1185_v41 = vpack.c.bf16 %v598_v38, %v597_v37  ;;  %v602_v50 = vld [vmem:[%s1599_s2 + $0x148] sm:$0xff]  ;;  %v619_v51 = vld [vmem:[%s1599_s2 + $0x1d0] sm:$0xff]  ;;  %v604_v58 = vld [vmem:[%s1599_s2 + $0x158] sm:$0xff] }
  0x1d   : > { %v621_v59 = vld [vmem:[%s1599_s2 + $0x1e0] sm:$0xff]  ;;  %v622_v60 = vld [vmem:[%s1599_s2 + $0x1e8] sm:$0xff]  ;;  %v623_v1 = vld [vmem:[%s1599_s2 + $0x1f0] sm:$0xff] }
  0x1e   : > { %1166 = vmatpush3.bf16.msra.mxu0 %v1165_v42  ;;  %v1187_v42 = vpack.c.bf16 %v616_v40, %v615_v39  ;;  %v1199_v62 = vpack.c.bf16 %v622_v60, %v621_v59  ;;  %v606_v0 = vld [vmem:[%s1599_s2 + $0x168] sm:$0xff]  ;;  %v608_v6 = vld [vmem:[%s1599_s2 + $0x178] sm:$0xff]  ;;  %v639_v12 = vld [vmem:[%s1599_s2 + $0x270] sm:$0xff] }
  0x1f   : > { %1168 = vmatprep.subr.bf16.mxu0 %v1167_v43  ;;  %v599_v43 = vld [vmem:[%s1599_s2 + $0x130] sm:$0xff]  ;;  %v640_v13 = vld [vmem:[%s1599_s2 + $0x278] sm:$0xff]  ;;  %v949_v27 = vld [vmem:[%s1600_s3] ss:$0 sm:$0xff] }
  0x20   : > { %v1189_v47 = vpack.c.bf16 %v600_v44, %v599_v43 }
  0x22   : > { %1170 = vmatpush3.bf16.msra.mxu0 %v1169_v48  ;;  %v1191_v48 = vpack.c.bf16 %v618_v46, %v617_v45 }
  0x23   : > { %1172 = vmatprep.subr.bf16.mxu0 %v1171_v49  ;;  %v601_v49 = vld [vmem:[%s1599_s2 + $0x140] sm:$0xff] }
  0x26   : > { %1174 = vmatpush3.bf16.msra.mxu0 %v1173_v52  ;;  %v620_v52 = vld [vmem:[%s1599_s2 + $0x1d8] sm:$0xff] }
  0x27   : > { %1208 = vmatprep.subr.bf16.mxu0 %v1207_v61 }
  0xea   : > { %v1407_v53 = vpop.f32.mrb[0].mxu1 }
  0xeb   : > { %v1409_v54 = vpop.f32.mrb[1].mxu1 }
  0xec   : > { %v1131_v55 = vpack.c.bf16 %v1407_v53, %v1409_v54  ;;  %712 = vmatprep.mubr.f32.mxu0 %v1409_v54 }
  0xed   : > { %713 = vmatmul.mubr.f32.vlgmr.msra.gmra.mrb[0].mxu0 %v1333_v16 }
  0xee   : > { %1132 = vmatprep.subr.bf16.mxu1 %v1131_v55  ;;  %717 = vmatprep.mubr.f32.mxu0 %v1407_v53 }
  0xef   : > { %1134 = vmatpush3.bf16.msra.mxu1 %v1131_v55  ;;  %1210 = vmatpush3.bf16.msra.mxu0 %v1207_v61 }
  0xf0   : > { %1136 = vmatprep.subr.bf16.mxu1 %v1131_v55  ;;  %1212 = vmatprep.subr.bf16.mxu0 %v1211_v63 }
  0xf1   : > { %718 = vmatmul.mubr.f32.gmra.mrb[2].mxu0 %v1335_v17 }
  0xf2   : > { %1076 = vmatmul.mubr.msk.f32.vlgmr.msra.gmra.mrb[2].mxu1 %vm206_vm0, %v205_v24  ;;  %v1175_v24 = vpack.c.bf16 %v610_v20, %v609_v19 }
  0xf3   : > { %1138 = vmatpush3.bf16.msra.mxu1 %v1131_v55  ;;  %1082 = vmatprep.mubr.msk.f32.mxu1 %vm206_vm0, %v943_v56  ;;  %v1193_v55 = vpack.c.bf16 %v602_v50, %v601_v49 }
  0xf4   : > { %1214 = vmatpush3.bf16.msra.mxu0 %v1211_v63  ;;  %v605_v63 = vld [vmem:[%s1599_s2 + $0x160] sm:$0xff] }
  0xf5   : > { %1216 = vmatprep.subr.bf16.mxu0 %v1215_v2  ;;  %v1201_v3 = vpack.c.bf16 %v606_v0, %v605_v63 }
  0xf6   : > { %1083 = vmatmul.mubr.msk.f32.vlgmr.msra.gmra.mrb[4].mxu1 %vm206_vm0, %v944_v57 }
  0xf7   : > { %1089 = vmatprep.mubr.msk.f32.mxu1 %vm206_vm0, %v943_v56  ;;  %v1195_v56 = vpack.c.bf16 %v620_v52, %v619_v51 }
  0xf8   : > { %1218 = vmatpush3.bf16.msra.mxu0 %v1215_v2  ;;  %v624_v2 = vld [vmem:[%s1599_s2 + $0x1f8] sm:$0xff] }
  0xf9   : > { %1220 = vmatprep.subr.bf16.mxu0 %v1219_v5  ;;  %v1203_v4 = vpack.c.bf16 %v624_v2, %v623_v1 }
  0xfc   : > { %1222 = vmatpush3.bf16.msra.mxu0 %v1219_v5  ;;  %v607_v5 = vld [vmem:[%s1599_s2 + $0x170] sm:$0xff] }
  0xfd   : > { %1224 = vmatprep.subr.bf16.mxu0 %v1223_v8  ;;  %v1205_v7 = vpack.c.bf16 %v608_v6, %v607_v5 }
 0x100   : > { %1226 = vmatpush3.bf16.msra.mxu0 %v1223_v8 }
 0x101   : > { %1228 = vmatprep.subr.bf16.mxu0 %v1227_v11 }
 0x104   : > { %1230 = vmatpush3.bf16.msra.mxu0 %v1227_v11 }
 0x105   : > { %1232 = vmatprep.subr.bf16.mxu0 %v1231_v14 }
 0x108   : > { %1234 = vmatpush3.bf16.msra.mxu0 %v1231_v14  ;;  %v1235_v14 = vpack.c.bf16 %v640_v13, %v639_v12 }
 0x10a   : > { %1236 = vmatprep.subr.bf16.mxu0 %v1235_v14 }
 0x10c   : > { %1238 = vmatpush3.bf16.msra.mxu0 %v1235_v14 }
 0x1c5   : > { %v1469_v15 = vpop.f32.mrb[2].mxu1 }
 0x1c6   : > { %v1471_v18 = vpop.f32.mrb[3].mxu1  ;;  %v369_v9 = vmul.f32 2.0, %v1469_v15  ;;  %v1002_v15 = vpop.f32.mrb[0].mxu0 }
 0x1c7   : > { %v368_v8 = vmul.f32 2.0, %v1471_v18  ;;  %v1003_v18 = vpop.f32.mrb[1].mxu0 }
 0x1c8   : > { %v373_v11 = vsub.f32 %v369_v9, %v1335_v17  ;;  %v1005_v19 = vpop.f32.mrb[2].mxu0 }
 0x1c9   : > { %v1479_v21 = vpop.f32.mrb[4].mxu1  ;;  %v372_v10 = vsub.f32 %v368_v8, %v1333_v16  ;;  %v1004_v16 = vadd.f32 %v1003_v18, %v1002_v15  ;;  %v1006_v20 = vpop.f32.mrb[3].mxu0 }
 0x1ca   : > { %v453_v22 = vpop.f32.mrb[5].mxu1 }
 0x1cb   : > { %v1139_v23 = vpack.c.bf16 %v1479_v21, %v453_v22  ;;  %v715_v28 = vadd.f32 %v1004_v16, %v949_v27 }
 0x1cd   : > { %1140 = vmatprep.subr.bf16.mxu1 %v1139_v23 }
 0x1ce   : > { %1142 = vmatpush3.bf16.msra.mxu1 %v1139_v23 }
 0x1cf   : > { %1176 = vmatprep.subr.bf16.mxu1 %v1175_v24 }
 0x1d1   : > { %1090 = vmatmul.mubr.msk.f32.vlgmr.msra.gmra.mrb[6].mxu1 %vm206_vm0, %v944_v57  ;;  %v603_v57 = vld [vmem:[%s1599_s2 + $0x150] sm:$0xff] }
 0x1d2   : > { %1178 = vmatpush3.bf16.msra.mxu1 %v1177_v29  ;;  %787 = vmatprep.mubr.f32.mxu1 %v453_v22  ;;  %v1197_v61 = vpack.c.bf16 %v604_v58, %v603_v57 }
 0x1d3   : > { %1180 = vmatprep.subr.bf16.mxu1 %v1179_v30 }
 0x1d6   : > { %1182 = vmatpush3.bf16.msra.mxu1 %v1181_v35 }
 0x1d7   : > { %1184 = vmatprep.subr.bf16.mxu1 %v1183_v36 }
 0x1da   : > { %1186 = vmatpush3.bf16.msra.mxu1 %v1185_v41 }
 0x1db   : > { %1188 = vmatprep.subr.bf16.mxu1 %v1187_v42 }
 0x1de   : > { %1190 = vmatpush3.bf16.msra.mxu1 %v1189_v47 }
 0x1df   : > { %1192 = vmatprep.subr.bf16.mxu1 %v1191_v48 }
 0x1e2   : > { %1194 = vmatpush3.bf16.msra.mxu1 %v1193_v55 }
 0x1e3   : > { %1196 = vmatprep.subr.bf16.mxu1 %v1195_v56 }
 0x1e6   : > { %1198 = vmatpush3.bf16.msra.mxu1 %v1197_v61 }
 0x1e7   : > { %1200 = vmatprep.subr.bf16.mxu1 %v1199_v62 }
 0x1ea   : > { %1202 = vmatpush3.bf16.msra.mxu1 %v1201_v3 }
 0x1eb   : > { %1204 = vmatprep.subr.bf16.mxu1 %v1203_v4 }
 0x1ee   : > { %1206 = vmatpush3.bf16.msra.mxu1 %v1205_v7 }
 0x1f1   : > { %788 = vmatmul.mubr.f32.vlgmr.msra.gmra.mrb[8].mxu1 %v372_v10 }
 0x1f2   : > { %792 = vmatprep.mubr.f32.mxu1 %v1479_v21  ;;  %v1007_v21 = vadd.f32 %v1006_v20, %v1005_v19 }
 0x1f4   : > { %v720_v32 = vadd.f32 %v1007_v21, %v949_v27 }
 0x1f5   : > { %793 = vmatmul.mubr.f32.gmra.mrb[10].mxu1 %v373_v11 }
 0x2a4   : > { %v1091_v22 = vpop.f32.mrb[6].mxu1 }
 0x2a5   : > { %v542_v17 = vmul.f32 2.0, %v1091_v22  ;;  %v532_v23 = vpop.f32.mrb[7].mxu1 }
 0x2a6   : > { %v541_v24 = vmul.f32 2.0, %v532_v23 }
 0x2a7   : > { %v546_v25 = vsub.f32 %v542_v17, %v1407_v53 }
 0x2a8   : > { %v545_v26 = vsub.f32 %v541_v24, %v1409_v54 }
 0x2aa   : > { %1124 = vmatprep.mubr.f32.mxu0 %v545_v26 }
 0x2ab   : > { %1125 = vmatmul.mubr.f32.vlgmr.msra.gmra.mrb[4].mxu0 %v546_v25 }
 0x2c4   : > { %v1040_v29 = vpop.f32.mrb[8].mxu1 }
 0x2c5   : > { %v1041_v30 = vpop.f32.mrb[9].mxu1 }
 0x2c6   : > { %v1042_v31 = vadd.f32 %v1041_v30, %v1040_v29 }
 0x2c8   : > { %v1043_v33 = vpop.f32.mrb[10].mxu1  ;;  %v790_v34 = vadd.f32 %v1042_v31, %v715_v28 }
 0x2c9   : > { %v1044_v35 = vpop.f32.mrb[11].mxu1 }
 0x2ca   : > { %v1045_v36 = vadd.f32 %v1044_v35, %v1043_v33 }
 0x2cc   : > { %v795_v37 = vadd.f32 %v1045_v36, %v720_v32 }
 0x37e   : > { %v1126_v53 = vpop.f32.mrb[4].mxu0 }
 0x37f   : > { %v870_v54 = vadd.f32 %v1126_v53, %v795_v37  ;;  %v864_v38 = vpop.f32.mrb[5].mxu0 }
 0x380   : > { %v865_v39 = vadd.f32 %v864_v38, %v790_v34 }
 0x381   : > { %874 = vst [vmem:[%s197_s5 + $0x8] sm:$0xff] %v870_v54 }
 0x382   : > { %873 = vst [vmem:[%s197_s5] sm:$0xff] %v865_v39 }
 0x383 PF: > { %s14_s15 = sadd.s32 1, %s1253_s15  }
 0x384   : > { %p11_p4 = scmp.ge.s32.totalorder %s14_s15, 4  }
 0x386   :  { %13 = sbr.rel (!%p11_p4) target bundleno = 1 (0x1), region = 68 }

</bundles_post_ra>
